<compile_context>
chip_gen: v5e
topology: v5e:2x2
jax: 0.10.0
libtpu: 0.0.40
codegen_flags: <defaults>
</compile_context>

<pallas_src>
import functools

import jax
import jax.numpy as jnp
from jax.experimental import pallas as pl
from jax.experimental.pallas import tpu as pltpu

Q = 0.6
_LANE = 128
_BLOCK_BYTE_BUDGET = 6 * 1024 * 1024   # one input block; pipeline double-buffers
_MAX_UNITS = 512                        # <= 512*128 = 65536 spatial elems/block


def _ceil_div(a, b):
    return -(-a // b)


def _pick_blocks(num_units, bytes_per_unit, granule):
    """Units per spatial block and number of blocks along the spatial axis.

    A "unit" is one 128-lane group (generic path) or one (1, 128) row of the
    4-D view (fast path).  Block size is capped so one input block stays under
    ~6 MiB (double-buffered ~12 MiB: safe under v5e's 16 MiB scoped default)
    while remaining large enough to amortize the ~0.35 us per-grid-step cost.
    """
    cap = _BLOCK_BYTE_BUDGET // max(1, bytes_per_unit)
    cap = max(granule, (cap // granule) * granule)
    cap = min(cap, _MAX_UNITS)
    if num_units <= cap:
        return num_units, 1                      # one block spans the whole axis
    nb = _ceil_div(num_units, cap)
    ub = _ceil_div(_ceil_div(num_units, nb), granule) * granule  # min tail waste
    return ub, _ceil_div(num_units, ub)


def _split_outer(nb):
    """Split the spatial blocks into (parallel outer, arbitrary inner) factors
    so v7x's two TensorCores both get spatial work even at batch size 1."""
    for d in (2, 3):
        if nb % d == 0:
            return d, nb // d
    return 1, nb


def _renyi_kernel(x_ref, o_ref, *, valid_extent, s_inner, mask_tail, bf16_eup):
    si = pl.program_id(2)

    @pl.when(si == 0)
    def _():
        o_ref[...] = jnp.zeros_like(o_ref)

    # predict holds softmax probabilities (>= 0), so pow(x, q) == exp(q*log(x));
    # exact zeros give exp(-inf) == 0, matching torch.pow(0., 0.6) == 0.
    if bf16_eup:
        # v6e/v7x only: bf16 EUP ~2x transcendental throughput, ~1e-3 rel error.
        powered = jnp.exp(Q * jnp.log(x_ref[...].astype(jnp.bfloat16)))
        powered = powered.astype(jnp.float32)
    else:
        powered = jnp.exp(Q * jnp.log(x_ref[...].astype(jnp.float32)))

    csum = jnp.sum(powered, axis=1, keepdims=True)    # channel reduce (VPU adds)
    r = jnp.log(csum) * (1.0 / (1.0 - Q))             # per-pixel Renyi entropy

    if mask_tail:
        # Zero positions past the end of the spatial axis in the ragged block
        # (garbage/NaN computed on padded reads is selected away, never summed).
        blk = pl.program_id(1) * s_inner + si
        extent = r.shape[2]                           # rows (4-D) / lanes (3-D)
        idx = jax.lax.broadcasted_iota(jnp.int32, r.shape, 2)
        r = jnp.where(blk * extent + idx < valid_extent, r, 0.0)

    # Output block is resident across the inner 'arbitrary' axis: accumulate
    # directly into it (no scratch, no final copy).
    o_ref[...] += r


def renyi_pallas(predict, *, bf16_eup=False):
    """predict: (n, c, h, w) probability tensor -> scalar float32 loss."""
    n, c, h, w = predict.shape
    hw = h * w
    itemsize = jnp.dtype(predict.dtype).itemsize
    bytes_per_unit = c * _LANE * itemsize             # per 128-lane spatial unit

    if hw % _LANE == 0:
        # Fast path: (n, c, rows, 128) view keeps c off the sublanes -> full
        # vreg occupancy for the pow, channel sum, outer log and accumulate.
        rows = hw // _LANE
        x = predict.reshape(n, c, rows, _LANE)
        tb, nb = _pick_blocks(rows, bytes_per_unit, granule=8)
        s_outer, s_inner = _split_outer(nb)
        valid_extent = rows
        mask_tail = (rows % tb) != 0
        in_spec = pl.BlockSpec(
            (1, c, tb, _LANE), lambda b, so, si: (b, 0, so * s_inner + si, 0))
        out_spec = pl.BlockSpec(
            (1, 1, tb, _LANE), lambda b, so, si: (b, so, 0, 0))
        out_shape = jax.ShapeDtypeStruct((n, s_outer, tb, _LANE), jnp.float32)
        out_bytes = 4 * n * s_outer * tb * _LANE
    else:
        # Generic path: (n, c, hw) with lane masking for the ragged tail.
        x = predict.reshape(n, c, hw)
        ub, nb = _pick_blocks(_ceil_div(hw, _LANE), bytes_per_unit, granule=1)
        tile = hw if nb == 1 else ub * _LANE          # full dim or 128-multiple
        s_outer, s_inner = _split_outer(nb)
        valid_extent = hw
        mask_tail = (hw % tile) != 0
        in_spec = pl.BlockSpec(
            (1, c, tile), lambda b, so, si: (b, 0, so * s_inner + si))
        out_spec = pl.BlockSpec((1, 1, tile), lambda b, so, si: (b, so, 0))
        out_shape = jax.ShapeDtypeStruct((n, s_outer, tile), jnp.float32)
        out_bytes = 4 * n * s_outer * tile

    kernel = functools.partial(
        _renyi_kernel,
        valid_extent=valid_extent,
        s_inner=s_inner,
        mask_tail=mask_tail,
        bf16_eup=bf16_eup,
    )

    partials = pl.pallas_call(
        kernel,
        out_shape=out_shape,
        grid_spec=pltpu.PrefetchScalarGridSpec(
            num_scalar_prefetch=0,
            grid=(n, s_outer, s_inner),
            in_specs=[in_spec],
            out_specs=out_spec,
        ),
        compiler_params=pltpu.CompilerParams(
            dimension_semantics=("parallel", "parallel", "arbitrary"),
        ),
        cost_estimate=pl.CostEstimate(
            flops=2 * n * c * hw,
            transcendentals=2 * n * c * hw + n * hw,  # exp+log per elem, + outer log
            bytes_accessed=n * c * hw * itemsize + out_bytes,
        ),
    )(x)

    # Tiny cross-block / cross-batch reduction + mean outside the kernel.
    return jnp.sum(partials) / (n * h * w)


def renyi_ref(predict):
    """Pure-JAX reference mirroring the PyTorch forward."""
    n, c, h, w = predict.shape
    renyi = jnp.sum(jnp.power(predict, Q), axis=1)    # (n, h, w)
    renyi = jnp.log(renyi) / (1.0 - Q)
    return jnp.sum(renyi) / (n * h * w)


if __name__ == "__main__":
    key = jax.random.PRNGKey(0)
    k1, k2, k3 = jax.random.split(key, 3)

    def run_case(k, shape):
        logits = jax.random.normal(k, shape, dtype=jnp.float32)
        predict = jax.nn.softmax(logits, axis=1)      # class probabilities
        out = renyi_pallas(predict)
        jax.block_until_ready(out)
        ref = renyi_ref(predict)
        assert jnp.allclose(out, ref, rtol=1e-4, atol=1e-6), (shape, out, ref)

    # 1) hw % 128 == 0 -> 4-D fast path (single spatial block).
    run_case(k1, (2, 4, 16, 16))
    # 2) hw % 128 != 0 -> generic path (block == full spatial dim).
    run_case(k2, (1, 3, 10, 10))
    # 3) multi-block spatial axis with ragged tail + (parallel, arbitrary) split.
    run_case(k3, (1, 4, 1540, 128))

    print("KERNEL_OK")
</pallas_src>

<mosaic_0001>
module attributes {stable_mosaic.version = 11 : i64} {
  func.func @_renyi_kernel(%arg0: i32, %arg1: i32, %arg2: i32, %arg3: memref<1x4x2x128xf32, #tpu.memory_space<vmem>>, %arg4: memref<1x1x2x128xf32, #tpu.memory_space<vmem>>) attributes {dimension_semantics = [#tpu.dimension_semantics<parallel>, #tpu.dimension_semantics<parallel>, #tpu.dimension_semantics<arbitrary>], iteration_bounds = array<i64: 2, 1, 1>, scalar_prefetch = 0 : i64, scratch_operands = 0 : i64, tpu.core_type = #tpu.core_type<tc>, window_params = [{transform_indices = @transform_0, window_bounds = array<i64: 1, 4, 2, 128>}, {transform_indices = @transform_1, window_bounds = array<i64: 1, 1, 2, 128>}]} {
    %c0_i32 = arith.constant 0 : i32
    %0 = arith.cmpi eq, %arg2, %c0_i32 : i32
    %1 = arith.extui %0 : i1 to i32
    %c0_i32_0 = arith.constant 0 : i32
    %2 = arith.cmpi ne, %1, %c0_i32_0 : i32
    scf.if %2 {
      %cst_14 = arith.constant 0.000000e+00 : f32
      %16 = vector.broadcast %cst_14 : f32 to vector<1x1x2x128xf32>
      %c0_15 = arith.constant 0 : index
      %c0_16 = arith.constant 0 : index
      %c0_17 = arith.constant 0 : index
      %c0_18 = arith.constant 0 : index
      %17 = vector.load %arg4[%c0_15, %c0_16, %c0_17, %c0_18] : memref<1x1x2x128xf32, #tpu.memory_space<vmem>>, vector<1x1x2x128xf32>
      tpu.vector_store %arg4[%c0_15, %c0_16, %c0_17, %c0_18], %16 {strides = array<i32>} : memref<1x1x2x128xf32, #tpu.memory_space<vmem>>, vector<1x1x2x128xf32>,
    } else {
    }
    %c0 = arith.constant 0 : index
    %c0_1 = arith.constant 0 : index
    %c0_2 = arith.constant 0 : index
    %c0_3 = arith.constant 0 : index
    %3 = vector.load %arg3[%c0, %c0_1, %c0_2, %c0_3] : memref<1x4x2x128xf32, #tpu.memory_space<vmem>>, vector<1x4x2x128xf32>
    %4 = math.log %3 : vector<1x4x2x128xf32>
    %cst = arith.constant 6.000000e-01 : f32
    %5 = vector.broadcast %cst : f32 to vector<1x4x2x128xf32>
    %6 = arith.mulf %5, %4 : vector<1x4x2x128xf32>
    %7 = math.exp %6 : vector<1x4x2x128xf32>
    %cst_4 = arith.constant dense<0.000000e+00> : vector<1x2x128xf32>
    %8 = vector.multi_reduction <add>, %7, %cst_4 [1] : vector<1x4x2x128xf32> to vector<1x2x128xf32>
    %9 = vector.shape_cast %8 : vector<1x2x128xf32> to vector<1x1x2x128xf32>
    %10 = math.log %9 : vector<1x1x2x128xf32>
    %cst_5 = arith.constant 2.500000e+00 : f32
    %11 = vector.broadcast %cst_5 : f32 to vector<1x1x2x128xf32>
    %12 = arith.mulf %10, %11 : vector<1x1x2x128xf32>
    %c0_6 = arith.constant 0 : index
    %c0_7 = arith.constant 0 : index
    %c0_8 = arith.constant 0 : index
    %c0_9 = arith.constant 0 : index
    %13 = vector.load %arg4[%c0_6, %c0_7, %c0_8, %c0_9] : memref<1x1x2x128xf32, #tpu.memory_space<vmem>>, vector<1x1x2x128xf32>
    %14 = arith.addf %13, %12 : vector<1x1x2x128xf32>
    %c0_10 = arith.constant 0 : index
    %c0_11 = arith.constant 0 : index
    %c0_12 = arith.constant 0 : index
    %c0_13 = arith.constant 0 : index
    %15 = vector.load %arg4[%c0_10, %c0_11, %c0_12, %c0_13] : memref<1x1x2x128xf32, #tpu.memory_space<vmem>>, vector<1x1x2x128xf32>
    tpu.vector_store %arg4[%c0_10, %c0_11, %c0_12, %c0_13], %14 {strides = array<i32>} : memref<1x1x2x128xf32, #tpu.memory_space<vmem>>, vector<1x1x2x128xf32>,
    return
  }
  func.func @transform_0(%arg0: i32, %arg1: i32, %arg2: i32) -> (i32, i32, i32, i32) {
    %c1_i32 = arith.constant 1 : i32
    %0 = arith.muli %arg1, %c1_i32 : i32
    %1 = arith.addi %0, %arg2 : i32
    %c0_i32 = arith.constant 0 : i32
    %c0_i32_0 = arith.constant 0 : i32
    %c0_i32_1 = arith.constant 0 : i32
    return %arg0, %c0_i32, %1, %c0_i32_0 : i32, i32, i32, i32
  }
  func.func @transform_1(%arg0: i32, %arg1: i32, %arg2: i32) -> (i32, i32, i32, i32) {
    %c0_i32 = arith.constant 0 : i32
    %c0_i32_0 = arith.constant 0 : i32
    %c0_i32_1 = arith.constant 0 : i32
    return %arg0, %arg1, %c0_i32, %c0_i32_0 : i32, i32, i32, i32
  }
}

</mosaic_0001>

<bundles_post_ra>
// kernel: tpu_custom_call.1
= control target key start
LH: loop header
LB: loop body
LE: loop exit
PB: predicated region body
PF: predicated region fallthrough
CT: control target
= control target key end

     0   :  { %6 = vsyncpa [#allocation3], 0  ;;  %s662_s0 = inlined_call_operand.hbm [shape: f32[2,4,2,128], index: 0, kind: input, shape index: {}]   ;;  %s663_s1 = inlined_call_operand.hbm [shape: f32[2,1,2,128], index: 1, kind: output, shape index: {}]  }
   0x1   :  { %8 = vsyncpa [#allocation3 + $0x1], 0 }
   0x2   :  { %9 = vsyncpa [#allocation4], 0 }
   0x3   :  { %11 = vsyncpa [#allocation4 + $0x1], 0  ;;  %s535_s6 = smov 0   ;;  %s537_s7 = smov 0  }
   0x4   :  { %s539_s8 = smov 0   ;;  %s541_s9 = smov 0  }
   0x5   :  { %s543_s10 = smov 0   ;;  %s545_s11 = smov 0  }
   0x6 LB: > { %s310_s12 = sadd.s32 4294967295, %s520_s11   ;;  %s311_s13 = sadd.s32 4294967294, %s520_s11   ;;  %s520_s11 = sphi %s545_s11, %s17_s11   ;;  %s516_s10 = sphi %s543_s10, %s672_s10   ;;  %s512_s9 = sphi %s541_s9, %s671_s9   ;;  %s508_s8 = sphi %s539_s8, %s670_s8   ;;  %s504_s7 = sphi %s537_s7, %s669_s7   ;;  %s500_s6 = sphi %s535_s6, %s668_s6  }
   0x7   : > { %s36_s14 = sadd.s32 1, %s516_s10  ;;  %s47_s15 = sadd.s32 1, %s508_s8 }
   0x8   : > { %p38_p0 = scmp.ge.s32.totalorder %s36_s14, 2  ;;  %p54_p1 = scmp.ne.s32.totalorder %s508_s8, %s504_s7 }
   0x9   : > { %p55_p2 = scmp.eq.s32.totalorder %s520_s11, 0  ;;  %p60_p3 = scmp.ne.s32.totalorder %s504_s7, %s500_s6 }
   0xa   : > { %s674_s14 = smov (%p38_p0, %s36_s14), 0  ;;  %p61_p5 = scmp.eq.s32.totalorder %s310_s12, 0 }
   0xb   : > { %p576_p4 = por %p55_p2, %p54_p1  ;;  %s42_s17 = ssub.s32 %s516_s10, %s674_s14 }
   0xc   : > { %p86_p6 = scmp.eq.s32.totalorder %s310_s12, 1  ;;  %p45_p7 = scmp.eq.s32.totalorder %s42_s17, 0 }
   0xd   : > { %p582_p8 = por %p61_p5, %p60_p3  ;;  %p92_p10 = scmp.eq.s32.totalorder %s311_s13, 1 }
   0xe   : > { %p586_p9 = por %p86_p6, %p54_p1  ;;  %p313_p12 = scmp.ge.s32.totalorder %s520_s11, 2 }
   0xf   : > { %s591_s20 = scalar_select %p45_p7, %s508_s8, %s47_s15  }
  0x10   : > { %p593_p11 = por %p92_p10, %p60_p3  ;;  %p337_p13 = scmp.lt.s32.totalorder %s520_s11, 2 }
  0x11   : > { %s112_s22 = sand.u32 1, %s508_s8   ;;  %s324_s24 = sshll.u32 %s516_s10, 3 }
  0x12   : > { %s314_s23 = sshll.u32 %s112_s22, 3  ;;  %s123_s27 = scalar_lea.hbm %s662_s0, %s324_s24 }
  0x13   : > { %s116_s28 = scalar_lea.vmem [#allocation2], %s314_s23  ;;  %s124_s30 = sshll.u32 %s123_s27, 4  ;;  %s125_s30 = int_to_ptr.hbm [resolvable:$true] %s124_s30 }
  0x14   : > { %s126_s29 = sshll.u32 %s116_s28, 4  ;;  %p330_p0 = pnand %p337_p13, %p576_p4  ;;  %s127_s29 = int_to_ptr.vmem [resolvable:$true] %s126_s29 }
  0x15   : > { %p317_p1 = scmp.ge.s32.totalorder %s520_s11, 1  ;;  %s113_s2 = scalar_lea.sflag [#allocation3], %s112_s22 }
  0x16   : > { %s522_s3 = smov 32   ;;  %s523_s4 = smov 2  }
  0x17   : > { %332 = dma.hbm_to_vmem [thread:$0]  (!%p330_p0), %s125_s30, 128, %s127_s29, %s113_s2, %s522_s3, %s522_s3, %s523_s4  }
  0x18   : > { %p134_p2 = scmp.lt.s32.totalorder %s520_s11, 3 }
  0x1a   : > { %p135_p3 = pnand %p317_p1, %p134_p2 }
  0x1b   : > { %s609_s5 = sand.u32 (!%p135_p3), 1, %s504_s7  }
  0x1c   : > { %138 = sbr.rel (%p135_p3) target bundleno = 79 (0x4f), region = 24  ;;  %s318_s12 = sshll.u32 (!%p135_p3), %s609_s5, 3 }
  0x1d   : > { %s141_s13 = scalar_lea.sflag (!%p135_p3), [#allocation3], %s609_s5  ;;  %s144_s15 = scalar_lea.vmem (!%p135_p3), [#allocation2], %s318_s12 }
  0x21   : > { %491 = dma.done.wait (%p582_p8), %s141_s13, 128  }
  0x22   : > { %493 = vsyncadd (%p582_p8), %s141_s13, 4294967168  ;;  %s319_s16 = sshll.u32 %s609_s5, 1  ;;  %v524_v0 = vmov 0.0   ;;  %v170_v1 = vld [vmem:[%s144_s15] sm:$0x3]  ;;  %vm194_vm0 = vcmask 1041408  }
  0x23   : > { %s618_s17 = scalar_lea.vmem [#allocation5], %s319_s16  ;;  %v171_v2 = vld [vmem:[%s144_s15 + $0x2] sm:$0x3]  ;;  %v172_v3 = vld [vmem:[%s144_s15 + $0x4] sm:$0x3]  ;;  %390 = vlog2.f32 %v170_v1  ;;  %s321_s18 = sshll.u32 %s512_s9, 1 }
  0x24   : > { %169 = vst [vmem:[%s618_s17] sm:$0x3] %v524_v0  ;;  %v173_v4 = vld [vmem:[%s144_s15 + $0x6] sm:$0x3]  ;;  %392 = vlog2.f32 %v171_v2  ;;  %s220_s24 = scalar_lea.hbm %s663_s1, %s321_s18  ;;  %s222_s25 = sshll.u32 %s618_s17, 4  ;;  %s223_s25 = int_to_ptr.vmem [resolvable:$true] %s222_s25 }
  0x25   : > { %394 = vlog2.f32 %v172_v3  ;;  %s224_s26 = sshll.u32 %s220_s24, 4  ;;  %s209_s27 = scalar_lea.sflag [#allocation4], %s609_s5  ;;  %s225_s26 = int_to_ptr.hbm [resolvable:$true] %s224_s26 }
  0x26   : > { %396 = vlog2.f32 %v173_v4  ;;  %s452_s28 = sshra.s32 %s225_s26, 4  ;;  %s458_s2 = scalar_lea.hbm %s663_s1, 4  ;;  %s453_s28 = int_to_ptr.hbm [resolvable:$true] %s452_s28 }
  0x27   : > { %s454_s29 = scalar_lea.hbm %s453_s28, 2  ;;  %p459_p7 = scmp.lt.s32.totalorder %s453_s28, %s663_s1 }
  0x28   : > { %p455_p4 = scmp.ne.s32.totalorder %s453_s28, %s454_s29  ;;  %p460_p8 = scmp.lt.s32.totalorder %s458_s2, %s454_s29 }
  0x29   : > { %v391_v5 = vpop.eup %390 }
  0x2a   : > { %v393_v6 = vpop.eup %392  ;;  %v175_v7 = vmul.f32 0.6931472, %v391_v5  ;;  %p456_p5 = pnand %p455_p4, %p586_p9  ;;  %p461_p10 = por %p460_p8, %p459_p7 }
  0x2b   : > { %v395_v8 = vpop.eup %394  ;;  %v177_v9 = vmul.f32 0.6931472, %v393_v6  ;;  %v205_v34 = vld [vmem:[%s618_s17] sm:$0x3] }
  0x2c   : > { %v397_v10 = vpop.eup %396  ;;  %v179_v11 = vmul.f32 0.6931472, %v395_v8  ;;  %v182_v12 = vmul.f32 0.6, %v175_v7  ;;  %p457_p6 = pneg %p456_p5 }
  0x2d   : > { %v181_v13 = vmul.f32 0.6931472, %v397_v10  ;;  %v183_v14 = vmul.f32 0.6, %v177_v9 }
  0x2e   : > { %v184_v15 = vmul.f32 0.6, %v179_v11  ;;  %v186_v16 = vmul.f32 1.442695, %v182_v12  ;;  %p462_p13 = pnand %p461_p10, %p457_p6 }
  0x2f   : > { %v185_v17 = vmul.f32 0.6, %v181_v13  ;;  %v188_v18 = vmul.f32 1.442695, %v183_v14 }
  0x30   : > { %398 = vpow2.f32 %v186_v16  ;;  %v190_v19 = vmul.f32 1.442695, %v184_v15 }
  0x31   : > { %400 = vpow2.f32 %v188_v18  ;;  %v192_v20 = vmul.f32 1.442695, %v185_v17 }
  0x32   : > { %402 = vpow2.f32 %v190_v19 }
  0x33   : > { %404 = vpow2.f32 %v192_v20 }
  0x36   : > { %v399_v21 = vpop.eup %398 }
  0x37   : > { %v401_v22 = vpop.eup %400  ;;  %v195_v23 = vsel %vm194_vm0, %v399_v21, 0.0 }
  0x38   : > { %v403_v24 = vpop.eup %402  ;;  %v196_v25 = vsel %vm194_vm0, %v401_v22, 0.0 }
  0x39   : > { %v405_v26 = vpop.eup %404  ;;  %v197_v27 = vadd.f32 %v196_v25, %v195_v23  ;;  %v198_v28 = vsel %vm194_vm0, %v403_v24, 0.0 }
  0x3a   : > { %v200_v29 = vsel %vm194_vm0, %v405_v26, 0.0 }
  0x3b   : > { %v199_v30 = vadd.f32 %v198_v28, %v197_v27 }
  0x3d   : > { %v201_v31 = vadd.f32 %v200_v29, %v199_v30 }
  0x3f   : > { %406 = vlog2.f32 %v201_v31 }
  0x45   : > { %v407_v32 = vpop.eup %406 }
  0x46   : > { %v203_v33 = vmul.f32 0.6931472, %v407_v32 }
  0x48   : > { %v204_v35 = vmul.f32 2.5, %v203_v33 }
  0x4a   : > { %v206_v36 = vadd.f32 %v205_v34, %v204_v35 }
  0x4c   : > { %207 = vst [vmem:[%s618_s17] sm:$0x3] %v206_v36 }
  0x4d   : > { %465 = shalt.err (!%p462_p13)
}
  0x4e   : > { %327 = dma.vmem_to_hbm [thread:$0]  (%p586_p9), %s223_s25, 32, %s225_s26, %s209_s27  }
  0x4f PF: > { %s236_s5 = sand.u32 1, %s500_s6   ;;  %p334_p0 = pnand %p313_p12, %p593_p11 }
  0x50   : > { %s237_s12 = scalar_lea.sflag [#allocation4], %s236_s5 }
  0x51   : > { %p335_p1 = pneg %p334_p0 }
  0x53   : > { %495 = dma.done.wait (%p335_p1), %s237_s12, 32  }
  0x54   : > { %497 = vsyncadd (%p335_p1), %s237_s12, 4294967264  ;;  %s17_s11 = sadd.s32 1, %s520_s11   ;;  %s668_s6 = smov %s504_s7 }
  0x55   : > { %p14_p2 = scmp.ge.s32.totalorder %s17_s11, 4   ;;  %s669_s7 = smov %s508_s8 }
  0x56   : > { %s670_s8 = smov %s591_s20  ;;  %s671_s9 = smov %s516_s10 }
  0x57   : > { %s672_s10 = smov %s674_s14  ;;  %16 = sbr.rel (!%p14_p2) target bundleno = 6 (0x6), region = 73 }
  0x5c   :  { %243 = vsyncpa [#allocation3], 1 }
  0x5d   :  { %245 = vsyncpa [#allocation3 + $0x1], 1 }
  0x5e   :  { %246 = vsyncpa [#allocation4], 1 }
  0x5f   :  { %248 = vsyncpa [#allocation4 + $0x1], 1 }

</bundles_post_ra>
